<compile_context>
chip_gen: v7x
topology: tpu7x:2x2x1
jax: 0.10.0
libtpu: 0.0.40
codegen_flags: <defaults>
</compile_context>

<pallas_src>
import jax
import jax.numpy as jnp
from jax.experimental import pallas as pl
from jax.experimental.pallas import tpu as pltpu


def _exp_kernel(x_ref, o_ref):
    # Elementwise exponential on the current VMEM tile (EUP transcendental).
    o_ref[...] = jnp.exp(x_ref[...])


_LANES = 512                      # lane-dense last dim (multiple of 128)
_TARGET_TILE_BYTES = 4 << 20      # ~4 MiB per tile -> ~16 MiB pipelined VMEM


def _round_up(x: int, m: int) -> int:
    return ((x + m - 1) // m) * m


def exponential(x: jnp.ndarray) -> jnp.ndarray:
    """Computes exp(x) with a Pallas TPU kernel (any shape, any float dtype)."""
    orig_shape = x.shape
    orig_dtype = x.dtype
    total = int(x.size)
    if total == 0:
        return x

    itemsize = jnp.dtype(orig_dtype).itemsize
    # Sublane packing: 8 rows/vreg for 32-bit, 16 for bf16, 32 for fp8/int8.
    sublane = 8 * max(1, 4 // itemsize)

    flat = x.reshape(-1)

    # Rows of the lane-dense slab needed to hold all elements.
    rows_needed = pl.cdiv(total, _LANES)

    # Tile rows sized to ~_TARGET_TILE_BYTES, aligned to the sublane packing.
    target_rows = max(
        sublane, (_TARGET_TILE_BYTES // (_LANES * itemsize)) // sublane * sublane
    )
    tr = min(target_rows, _round_up(rows_needed, sublane))

    # Give megacore (v7x: 2 TCs/chip) at least 2 parallel grid steps when
    # there is enough data to split.
    if rows_needed > sublane and _round_up(rows_needed, tr) // tr < 2:
        tr = max(sublane, _round_up(pl.cdiv(rows_needed, 2), sublane))

    # Pad the flat array (only when needed) so the slab row count is an exact
    # multiple of the tile rows -> stable tile size for any N, full-width vst.
    m = _round_up(rows_needed, tr)
    padded_total = m * _LANES
    needs_pad = padded_total != total
    if needs_pad:
        flat = jnp.pad(flat, (0, padded_total - total))
    slab = flat.reshape(m, _LANES)

    grid = (m // tr,)
    out = pl.pallas_call(
        _exp_kernel,
        out_shape=jax.ShapeDtypeStruct((m, _LANES), orig_dtype),
        grid_spec=pl.GridSpec(
            grid=grid,
            in_specs=[pl.BlockSpec((tr, _LANES), lambda i: (i, 0))],
            out_specs=pl.BlockSpec((tr, _LANES), lambda i: (i, 0)),
        ),
        compiler_params=pltpu.CompilerParams(
            dimension_semantics=("parallel",),
            # Raise scoped VMEM above the v5e (16 MiB) / v6e (32 MiB) defaults
            # while keeping headroom under v7x's 64 MiB physical VMEM per TC.
            vmem_limit_bytes=48 << 20,
        ),
    )(slab)

    if needs_pad:
        return out.reshape(-1)[:total].reshape(orig_shape)
    return out.reshape(orig_shape)


if __name__ == "__main__":
    key = jax.random.PRNGKey(0)

    # Small shape consistent with DARTS operations: (batch=8, hidden=32).
    x = jax.random.normal(key, (8, 32), dtype=jnp.float32)
    y = jax.block_until_ready(exponential(x))
    y_ref = jnp.exp(x)
    assert y.shape == x.shape and y.dtype == x.dtype
    assert jnp.allclose(y, y_ref, rtol=1e-6, atol=1e-6)

    # Exercise the padding / multi-step-grid path with a non-divisible shape.
    x2 = jax.random.normal(jax.random.PRNGKey(1), (257, 96), dtype=jnp.float32)
    y2 = jax.block_until_ready(exponential(x2))
    assert jnp.allclose(y2, jnp.exp(x2), rtol=1e-6, atol=1e-6)

    # Aligned shape takes the zero-copy (no pad / no slice) fast path.
    x3 = jax.random.normal(jax.random.PRNGKey(2), (64, 512), dtype=jnp.bfloat16)
    y3 = jax.block_until_ready(exponential(x3))
    assert y3.dtype == jnp.bfloat16
    assert jnp.allclose(
        y3.astype(jnp.float32), jnp.exp(x3.astype(jnp.float32)), rtol=2e-2, atol=2e-2
    )

    print("KERNEL_OK")
</pallas_src>

<mosaic_0001>
module attributes {stable_mosaic.version = 11 : i64} {
  func.func @_exp_kernel(%arg0: i32, %arg1: memref<8x512xf32, #tpu.memory_space<vmem>>, %arg2: memref<8x512xf32, #tpu.memory_space<vmem>>) attributes {dimension_semantics = [#tpu.dimension_semantics<parallel>], iteration_bounds = array<i64: 1>, scalar_prefetch = 0 : i64, scratch_operands = 0 : i64, tpu.core_type = #tpu.core_type<tc>, window_params = [{transform_indices = @transform_0, window_bounds = array<i64: 8, 512>}, {transform_indices = @transform_1, window_bounds = array<i64: 8, 512>}]} {
    %c0 = arith.constant 0 : index
    %c0_0 = arith.constant 0 : index
    %0 = vector.load %arg1[%c0, %c0_0] : memref<8x512xf32, #tpu.memory_space<vmem>>, vector<8x512xf32>
    %1 = math.exp %0 : vector<8x512xf32>
    %c0_1 = arith.constant 0 : index
    %c0_2 = arith.constant 0 : index
    %2 = vector.load %arg2[%c0_1, %c0_2] : memref<8x512xf32, #tpu.memory_space<vmem>>, vector<8x512xf32>
    tpu.vector_store %arg2[%c0_1, %c0_2], %1 {strides = array<i32>} : memref<8x512xf32, #tpu.memory_space<vmem>>, vector<8x512xf32>,
    return
  }
  func.func @transform_0(%arg0: i32) -> (i32, i32) {
    %c0_i32 = arith.constant 0 : i32
    %c0_i32_0 = arith.constant 0 : i32
    return %arg0, %c0_i32 : i32, i32
  }
  func.func @transform_1(%arg0: i32) -> (i32, i32) {
    %c0_i32 = arith.constant 0 : i32
    %c0_i32_0 = arith.constant 0 : i32
    return %arg0, %c0_i32 : i32, i32
  }
}

</mosaic_0001>

<bundles_post_ra>
// kernel: tpu_custom_call.1
= control target key start
LH: loop header
LB: loop body
LE: loop exit
PB: predicated region body
PF: predicated region fallthrough
CT: control target
= control target key end

     0   :  { %6 = vsyncpa [#allocation3], 0  ;;  %s146_s0 = inlined_call_operand.hbm [shape: f32[8,512], index: 0, kind: input, shape index: {}]   ;;  %s147_s1 = inlined_call_operand.hbm [shape: f32[8,512], index: 1, kind: output, shape index: {}]  }
   0x1   :  { %7 = vsyncpa [#allocation4], 0  ;;  %s110_s6 = smov [#allocation2]   ;;  %s62_s10 = scalar_lea.hbm %s146_s0, 512 }
   0x2   :  { %s14_s7 = sshll.u32 %s110_s6, 4  ;;  %p63_p0 = scmp.ne.s32.totalorder %s146_s0, %s62_s10  ;;  %s15_s7 = int_to_ptr.vmem [resolvable:$true] %s14_s7 }
   0x3   :  { %p66_p1 = scmp.lt.u32.totalorder %s62_s10, %s146_s0 }
   0x5   :  { %p68_p2 = pnand %p66_p1, %p63_p0 }
   0x7   :  { %71 = shalt.err (!%p68_p2)
}
   0x8   :  { %s72_s15 = scalar_lea.vmem %s15_s7, 512  ;;  %p77_p4 = scmp.lt.s32.totalorder %s15_s7, %s15_s7 }
   0x9   :  { %p73_p3 = scmp.ne.s32.totalorder %s15_s7, %s72_s15  ;;  %p78_p5 = scmp.lt.s32.totalorder %s72_s15, %s72_s15 }
   0xb   :  { %p79_p6 = por %p78_p5, %p77_p4 }
   0xd   :  { %p80_p7 = pnand %p79_p6, %p73_p3 }
   0xf   :  { %83 = shalt.err (!%p80_p7)
}
  0x10   :  { %17 = dma.hbm_to_vmem [thread:$0]  %s146_s0, 512, %s15_s7, [#allocation3]  }
  0x11   :  { %106 = dma.done.wait [#allocation3], 512  }
  0x12   :  { %107 = vsyncadd [#allocation3], 4294966784  ;;  %v21_v0 = vld [vmem:[#allocation2] sm:$0xff]  ;;  %v22_v1 = vld [vmem:[#allocation2 + $0x8] sm:$0xff]  ;;  %s111_s18 = smov [#allocation5]  }
  0x13   :  { %v23_v2 = vld [vmem:[#allocation2 + $0x10] sm:$0xff]  ;;  %v25_v3 = vmul.f32 1.442695, %v21_v0  ;;  %v27_v4 = vmul.f32 1.442695, %v22_v1  ;;  %v24_v6 = vld [vmem:[#allocation2 + $0x18] sm:$0xff] }
  0x14   :  { %v29_v5 = vmul.f32 1.442695, %v23_v2  ;;  %v31_v7 = vmul.f32 1.442695, %v24_v6  ;;  %s43_s19 = sshll.u32 %s111_s18, 4  ;;  %s44_s19 = int_to_ptr.vmem [resolvable:$true] %s43_s19 }
  0x15   :  { %54 = vpow2.f32 %v25_v3  ;;  %s84_s0 = scalar_lea.vmem %s44_s19, 512  ;;  %p89_p9 = scmp.lt.s32.totalorder %s44_s19, %s44_s19 }
  0x16   :  { %56 = vpow2.f32 %v27_v4  ;;  %p85_p8 = scmp.ne.s32.totalorder %s44_s19, %s84_s0  ;;  %p90_p10 = scmp.lt.s32.totalorder %s84_s0, %s84_s0 }
  0x17   :  { %58 = vpow2.f32 %v29_v5 }
  0x18   :  { %60 = vpow2.f32 %v31_v7  ;;  %p91_p11 = por %p90_p10, %p89_p9 }
  0x1a   :  { %p92_p12 = pnand %p91_p11, %p85_p8 }
  0x1f   :  { %v55_v8 = vpop.eup %54 }
  0x20   :  { %v57_v9 = vpop.eup %56  ;;  %33 = vst [vmem:[#allocation5] sm:$0xff] %v55_v8 }
  0x21   :  { %v59_v10 = vpop.eup %58  ;;  %34 = vst [vmem:[#allocation5 + $0x8] sm:$0xff] %v57_v9 }
  0x22   :  { %v61_v11 = vpop.eup %60  ;;  %35 = vst [vmem:[#allocation5 + $0x10] sm:$0xff] %v59_v10 }
  0x23   :  { %36 = vst [vmem:[#allocation5 + $0x18] sm:$0xff] %v61_v11 }
  0x24   :  { %95 = shalt.err (!%p92_p12)
}
  0x25   :  { %s96_s22 = scalar_lea.hbm %s147_s1, 512 }
  0x26   :  { %p97_p13 = scmp.ne.s32.totalorder %s147_s1, %s96_s22  ;;  %p100_p0 = scmp.lt.u32.totalorder %s96_s22, %s147_s1 }
  0x28   :  { %p102_p1 = pnand %p100_p0, %p97_p13 }
  0x2a   :  { %105 = shalt.err (!%p102_p1)
}
  0x2b   :  { %46 = dma.vmem_to_hbm [thread:$0]  %s44_s19, 512, %s147_s1, [#allocation4]  }
  0x2c   :  { %108 = dma.done.wait [#allocation4], 512  }
  0x2d   :  { %109 = vsyncadd [#allocation4], 4294966784 }
  0x2e   :  { %50 = vsyncpa [#allocation3], 1 }
  0x2f   :  { %51 = vsyncpa [#allocation4], 1 }

</bundles_post_ra>
